<compile_context>
chip_gen: v5e
topology: v5e:2x2
jax: 0.10.0
libtpu: 0.0.40
codegen_flags: <defaults>
</compile_context>

<pallas_src>
import jax
import jax.numpy as jnp
from jax.experimental import pallas as pl
from jax.experimental.pallas import tpu as pltpu


def _round_up(x, m):
    return (x + m - 1) // m * m


def _softplus(x):
    # numerically-stable softplus, matches torch.nn.Softplus default (beta=1)
    return jnp.logaddexp(x, 0.0)


def gated_transition_kernel(cz_ref, w1_ref, b1_ref, w2_ref, b2_ref,
                            wsig_ref, bsig_ref, out_ref):
    zd = wsig_ref.shape[0]          # true z_dim (narrow, un-padded)
    in_dt = w1_ref.dtype            # f32 (exact) or bf16 (fast MXU path)

    x = cz_ref[...]                 # (TB, 2*zd) = [z_t_1 | behavior]

    # fused layer 1: [_pm_hidden | _gate_hidden] =
    #   relu(x @ blockdiag(W_pm_h, W_gate_h) + b1)
    h = jnp.maximum(
        jnp.dot(x.astype(in_dt), w1_ref[...],
                preferred_element_type=jnp.float32) + b1_ref[...], 0.0)

    # fused layer 2: [proposed_mean | gate_pre] =
    #   h @ blockdiag(W_pm_z, W_gate_a) + b2
    y = (jnp.dot(h.astype(in_dt), w2_ref[...],
                 preferred_element_type=jnp.float32) + b2_ref[...])
    pm = y[:, :zd]
    gate = jax.nn.sigmoid(y[:, zd:])

    # loc = softplus(pm) * gate + z_t_1 * (1 - gate)
    # (z_t_1 re-read from VMEM here, not held live across the matmuls)
    z = cz_ref[:, :zd]
    loc = _softplus(pm) * gate + z * (1.0 - gate)

    # scale = softplus(relu(pm) @ W_sig + b_sig)
    s_pre = (jnp.dot(jnp.maximum(pm, 0.0).astype(in_dt), wsig_ref[...],
                     preferred_element_type=jnp.float32) + bsig_ref[...])
    scale = _softplus(s_pre)

    # single fused output slab [loc | scale] -> one writeback DMA per step
    out_ref[...] = jnp.concatenate([loc, scale], axis=-1).astype(out_ref.dtype)


def init_params(key, z_dim, transition_dim):
    """Deterministic init mirroring nn.Linear default (uniform +-1/sqrt(fan_in)).
    Weights stored transposed: (in_dim, out_dim)."""
    def linear(k, in_dim, out_dim):
        kw, kb = jax.random.split(k)
        bound = 1.0 / jnp.sqrt(in_dim)
        w = jax.random.uniform(kw, (in_dim, out_dim), jnp.float32, -bound, bound)
        b = jax.random.uniform(kb, (1, out_dim), jnp.float32, -bound, bound)
        return w, b

    k1, k2, k3, k4, k5 = jax.random.split(key, 5)
    w_gate_h, b_gate_h = linear(k1, z_dim, transition_dim)
    w_gate_a, b_gate_a = linear(k2, transition_dim, z_dim)
    w_pm_h, b_pm_h = linear(k3, z_dim, transition_dim)
    w_pm_z, b_pm_z = linear(k4, transition_dim, z_dim)
    w_sig, b_sig = linear(k5, z_dim, z_dim)
    return dict(
        w_gate_h=w_gate_h, b_gate_h=b_gate_h,
        w_gate_a=w_gate_a, b_gate_a=b_gate_a,
        w_pm_h=w_pm_h, b_pm_h=b_pm_h,
        w_pm_z=w_pm_z, b_pm_z=b_pm_z,
        w_sig=w_sig, b_sig=b_sig,
    )


def pack_params(p, z_dim, transition_dim, dtype=jnp.float32):
    """Build the two block-diagonal fused weights ONCE at true (un-padded) dims.

    dtype=jnp.bfloat16 enables the bf16-MXU path (v6e/v7x); biases stay f32.
    NOTE: for very large z_dim/transition_dim on v5e the block-diagonal form
    doubles MXU passes vs. 5 separate dense dots — split there if needed.
    """
    zd, td = z_dim, transition_dim

    # layer 1: input lanes [0,zd) = z_t_1, [zd,2zd) = behavior
    #          output lanes [0,td) = _pm hidden, [td,2td) = _gate hidden
    w1 = jnp.zeros((2 * zd, 2 * td), jnp.float32)
    w1 = w1.at[:zd, :td].set(p["w_pm_h"])
    w1 = w1.at[zd:, td:].set(p["w_gate_h"])
    b1 = jnp.concatenate([p["b_pm_h"], p["b_gate_h"]], axis=1)

    # layer 2: output lanes [0,zd) = proposed_mean, [zd,2zd) = gate pre-sigmoid
    w2 = jnp.zeros((2 * td, 2 * zd), jnp.float32)
    w2 = w2.at[:td, :zd].set(p["w_pm_z"])
    w2 = w2.at[td:, zd:].set(p["w_gate_a"])
    b2 = jnp.concatenate([p["b_pm_z"], p["b_gate_a"]], axis=1)

    return dict(
        w1=w1.astype(dtype), b1=b1,
        w2=w2.astype(dtype), b2=b2,
        wsig=p["w_sig"].astype(dtype), bsig=p["b_sig"],
        z_dim=zd, transition_dim=td,
    )


def gated_transition_forward(combine_z, packed):
    """combine_z: [B, 2, z_dim] f32.  Returns (loc, scale): [B, 1, z_dim]."""
    B, two, zd = combine_z.shape
    td = packed["transition_dim"]
    assert two == 2 and zd == packed["z_dim"]

    # batch tiling: large tiles amortize per-step pipeline overhead; the
    # narrow lane width keeps the VMEM footprint tiny even at 1024 rows.
    tile_b = min(1024, _round_up(B, 8))
    b_pad = _round_up(B, tile_b)

    # single narrow activation operand: each row = [z_t_1(zd) | behavior(zd)]
    cz = combine_z.reshape(B, 2 * zd)
    if b_pad != B:
        cz = jnp.pad(cz, ((0, b_pad - B), (0, 0)))

    grid_spec = pltpu.PrefetchScalarGridSpec(
        num_scalar_prefetch=0,
        grid=(b_pad // tile_b,),
        in_specs=[
            pl.BlockSpec((tile_b, 2 * zd), lambda i: (i, 0)),   # activations
            pl.BlockSpec((2 * zd, 2 * td), lambda i: (0, 0)),   # W1 (resident)
            pl.BlockSpec((1, 2 * td), lambda i: (0, 0)),        # b1
            pl.BlockSpec((2 * td, 2 * zd), lambda i: (0, 0)),   # W2 (resident)
            pl.BlockSpec((1, 2 * zd), lambda i: (0, 0)),        # b2
            pl.BlockSpec((zd, zd), lambda i: (0, 0)),           # W_sig
            pl.BlockSpec((1, zd), lambda i: (0, 0)),            # b_sig
        ],
        out_specs=pl.BlockSpec((tile_b, 2 * zd), lambda i: (i, 0)),  # [loc|scale]
    )

    out = pl.pallas_call(
        gated_transition_kernel,
        out_shape=jax.ShapeDtypeStruct((b_pad, 2 * zd), jnp.float32),
        grid_spec=grid_spec,
        compiler_params=pltpu.CompilerParams(
            dimension_semantics=("parallel",),
            vmem_limit_bytes=64 * 1024 * 1024),
    )(cz, packed["w1"], packed["b1"], packed["w2"], packed["b2"],
      packed["wsig"], packed["bsig"])

    # match PyTorch output shape [B, 1, z_dim]
    loc = out[:B, :zd][:, None, :]
    scale = out[:B, zd:][:, None, :]
    return loc, scale


def reference_forward(combine_z, p):
    """Pure-JAX reference of the PyTorch forward (un-fused params)."""
    z = combine_z[:, 0, :]
    beh = combine_z[:, 1, :]
    _gate = jax.nn.relu(beh @ p["w_gate_h"] + p["b_gate_h"])
    gate = jax.nn.sigmoid(_gate @ p["w_gate_a"] + p["b_gate_a"])
    _pm = jax.nn.relu(z @ p["w_pm_h"] + p["b_pm_h"])
    pm = _pm @ p["w_pm_z"] + p["b_pm_z"]
    loc = jax.nn.softplus(pm) * gate + z * (1.0 - gate)
    scale = jax.nn.softplus(jax.nn.relu(pm) @ p["w_sig"] + p["b_sig"])
    return loc[:, None, :], scale[:, None, :]


if __name__ == "__main__":
    B, z_dim, transition_dim = 4, 8, 32

    key = jax.random.PRNGKey(0)
    k_params, k_input = jax.random.split(key)
    params = init_params(k_params, z_dim, transition_dim)
    packed = pack_params(params, z_dim, transition_dim)   # f32: exact parity
    combine_z = jax.random.normal(k_input, (B, 2, z_dim), jnp.float32)

    loc, scale = gated_transition_forward(combine_z, packed)
    loc = jax.block_until_ready(loc)
    scale = jax.block_until_ready(scale)

    loc_ref, scale_ref = reference_forward(combine_z, params)
    assert loc.shape == (B, 1, z_dim) and scale.shape == (B, 1, z_dim)
    assert jnp.allclose(loc, loc_ref, atol=1e-5, rtol=1e-5)
    assert jnp.allclose(scale, scale_ref, atol=1e-5, rtol=1e-5)

    print("KERNEL_OK")
</pallas_src>

<mosaic_0001>
module attributes {stable_mosaic.version = 11 : i64} {
  func.func @gated_transition_kernel(%arg0: i32, %arg1: memref<8x16xf32, #tpu.memory_space<vmem>>, %arg2: memref<16x64xf32, #tpu.memory_space<vmem>>, %arg3: memref<1x64xf32, #tpu.memory_space<vmem>>, %arg4: memref<64x16xf32, #tpu.memory_space<vmem>>, %arg5: memref<1x16xf32, #tpu.memory_space<vmem>>, %arg6: memref<8x8xf32, #tpu.memory_space<vmem>>, %arg7: memref<1x8xf32, #tpu.memory_space<vmem>>, %arg8: memref<8x16xf32, #tpu.memory_space<vmem>>) attributes {dimension_semantics = [#tpu.dimension_semantics<parallel>], iteration_bounds = array<i64: 1>, scalar_prefetch = 0 : i64, scratch_operands = 0 : i64, tpu.core_type = #tpu.core_type<tc>, window_params = [{transform_indices = @transform_0, window_bounds = array<i64: 8, 16>}, {pipeline_mode = #tpu.pipeline_mode<synchronous>, transform_indices = @transform_1, window_bounds = array<i64: 16, 64>}, {pipeline_mode = #tpu.pipeline_mode<synchronous>, transform_indices = @transform_2, window_bounds = array<i64: 1, 64>}, {pipeline_mode = #tpu.pipeline_mode<synchronous>, transform_indices = @transform_3, window_bounds = array<i64: 64, 16>}, {pipeline_mode = #tpu.pipeline_mode<synchronous>, transform_indices = @transform_4, window_bounds = array<i64: 1, 16>}, {pipeline_mode = #tpu.pipeline_mode<synchronous>, transform_indices = @transform_5, window_bounds = array<i64: 8, 8>}, {pipeline_mode = #tpu.pipeline_mode<synchronous>, transform_indices = @transform_6, window_bounds = array<i64: 1, 8>}, {transform_indices = @transform_7, window_bounds = array<i64: 8, 16>}]} {
    %c0 = arith.constant 0 : index
    %c0_0 = arith.constant 0 : index
    %0 = vector.load %arg1[%c0, %c0_0] : memref<8x16xf32, #tpu.memory_space<vmem>>, vector<8x16xf32>
    %c0_1 = arith.constant 0 : index
    %c0_2 = arith.constant 0 : index
    %1 = vector.load %arg2[%c0_1, %c0_2] : memref<16x64xf32, #tpu.memory_space<vmem>>, vector<16x64xf32>
    %cst = arith.constant dense<0.000000e+00> : vector<8x64xf32>
    %2 = tpu.matmul %0, %1, %cst {dimension_numbers = #tpu.dot_dimension_numbers<[1], [0], [0], [1], [0, 0, 1, 1], [], []>} : vector<8x16xf32>, vector<16x64xf32>, vector<8x64xf32> -> vector<8x64xf32>
    %c0_3 = arith.constant 0 : index
    %c0_4 = arith.constant 0 : index
    %3 = vector.load %arg3[%c0_3, %c0_4] : memref<1x64xf32, #tpu.memory_space<vmem>>, vector<1x64xf32>
    %4 = vector.broadcast %3 : vector<1x64xf32> to vector<8x64xf32>
    %5 = arith.addf %2, %4 : vector<8x64xf32>
    %cst_5 = arith.constant 0.000000e+00 : f32
    %6 = vector.broadcast %cst_5 : f32 to vector<8x64xf32>
    %7 = arith.maximumf %5, %6 : vector<8x64xf32>
    %c0_6 = arith.constant 0 : index
    %c0_7 = arith.constant 0 : index
    %8 = vector.load %arg4[%c0_6, %c0_7] : memref<64x16xf32, #tpu.memory_space<vmem>>, vector<64x16xf32>
    %cst_8 = arith.constant dense<0.000000e+00> : vector<8x16xf32>
    %9 = tpu.matmul %7, %8, %cst_8 {dimension_numbers = #tpu.dot_dimension_numbers<[1], [0], [0], [1], [0, 0, 1, 1], [], []>} : vector<8x64xf32>, vector<64x16xf32>, vector<8x16xf32> -> vector<8x16xf32>
    %c0_9 = arith.constant 0 : index
    %c0_10 = arith.constant 0 : index
    %10 = vector.load %arg5[%c0_9, %c0_10] : memref<1x16xf32, #tpu.memory_space<vmem>>, vector<1x16xf32>
    %11 = vector.broadcast %10 : vector<1x16xf32> to vector<8x16xf32>
    %12 = arith.addf %9, %11 : vector<8x16xf32>
    %13 = vector.extract_strided_slice %12 {offsets = [0, 0], sizes = [8, 8], strides = [1, 1]} : vector<8x16xf32> to vector<8x8xf32>
    %14 = vector.extract_strided_slice %12 {offsets = [0, 8], sizes = [8, 8], strides = [1, 1]} : vector<8x16xf32> to vector<8x8xf32>
    %15 = arith.negf %14 : vector<8x8xf32>
    %16 = math.exp %15 : vector<8x8xf32>
    %cst_11 = arith.constant 1.000000e+00 : f32
    %17 = vector.broadcast %cst_11 : f32 to vector<8x8xf32>
    %18 = arith.addf %17, %16 : vector<8x8xf32>
    %19 = arith.divf %17, %18 : vector<8x8xf32>
    %c0_12 = arith.constant 0 : index
    %c0_13 = arith.constant 0 : index
    %20 = vector.load %arg1[%c0_12, %c0_13] : memref<8x16xf32, #tpu.memory_space<vmem>>, vector<8x8xf32>
    %cst_14 = arith.constant 0.000000e+00 : f32
    %21 = vector.broadcast %cst_14 : f32 to vector<8x8xf32>
    %22 = arith.maximumf %13, %21 : vector<8x8xf32>
    %23 = vector.broadcast %cst_14 : f32 to vector<8x8xf32>
    %24 = arith.subf %13, %23 : vector<8x8xf32>
    %25 = arith.cmpf one, %24, %24 : vector<8x8xf32>
    %26 = vector.broadcast %cst_14 : f32 to vector<8x8xf32>
    %27 = arith.addf %13, %26 : vector<8x8xf32>
    %28 = math.absf %24 : vector<8x8xf32>
    %cst_15 = arith.constant 0.000000e+00 : f32
    %29 = vector.broadcast %cst_15 : f32 to vector<8x8xf32>
    %30 = arith.subf %29, %28 : vector<8x8xf32>
    %31 = math.exp %30 : vector<8x8xf32>
    %32 = math.log1p %31 : vector<8x8xf32>
    %33 = arith.addf %22, %32 : vector<8x8xf32>
    %34 = arith.select %25, %27, %33 : vector<8x8xi1>, vector<8x8xf32>
    %35 = arith.mulf %34, %19 : vector<8x8xf32>
    %cst_16 = arith.constant 1.000000e+00 : f32
    %36 = vector.broadcast %cst_16 : f32 to vector<8x8xf32>
    %37 = arith.subf %36, %19 : vector<8x8xf32>
    %38 = arith.mulf %20, %37 : vector<8x8xf32>
    %39 = arith.addf %35, %38 : vector<8x8xf32>
    %cst_17 = arith.constant 0.000000e+00 : f32
    %40 = vector.broadcast %cst_17 : f32 to vector<8x8xf32>
    %41 = arith.maximumf %13, %40 : vector<8x8xf32>
    %c0_18 = arith.constant 0 : index
    %c0_19 = arith.constant 0 : index
    %42 = vector.load %arg6[%c0_18, %c0_19] : memref<8x8xf32, #tpu.memory_space<vmem>>, vector<8x8xf32>
    %cst_20 = arith.constant dense<0.000000e+00> : vector<8x8xf32>
    %43 = tpu.matmul %41, %42, %cst_20 {dimension_numbers = #tpu.dot_dimension_numbers<[1], [0], [0], [1], [0, 0, 1, 1], [], []>} : vector<8x8xf32>, vector<8x8xf32>, vector<8x8xf32> -> vector<8x8xf32>
    %c0_21 = arith.constant 0 : index
    %c0_22 = arith.constant 0 : index
    %44 = vector.load %arg7[%c0_21, %c0_22] : memref<1x8xf32, #tpu.memory_space<vmem>>, vector<1x8xf32>
    %45 = vector.broadcast %44 : vector<1x8xf32> to vector<8x8xf32>
    %46 = arith.addf %43, %45 : vector<8x8xf32>
    %cst_23 = arith.constant 0.000000e+00 : f32
    %47 = vector.broadcast %cst_23 : f32 to vector<8x8xf32>
    %48 = arith.maximumf %46, %47 : vector<8x8xf32>
    %49 = vector.broadcast %cst_23 : f32 to vector<8x8xf32>
    %50 = arith.subf %46, %49 : vector<8x8xf32>
    %51 = arith.cmpf one, %50, %50 : vector<8x8xf32>
    %52 = vector.broadcast %cst_23 : f32 to vector<8x8xf32>
    %53 = arith.addf %46, %52 : vector<8x8xf32>
    %54 = math.absf %50 : vector<8x8xf32>
    %cst_24 = arith.constant 0.000000e+00 : f32
    %55 = vector.broadcast %cst_24 : f32 to vector<8x8xf32>
    %56 = arith.subf %55, %54 : vector<8x8xf32>
    %57 = math.exp %56 : vector<8x8xf32>
    %58 = math.log1p %57 : vector<8x8xf32>
    %59 = arith.addf %48, %58 : vector<8x8xf32>
    %60 = arith.select %51, %53, %59 : vector<8x8xi1>, vector<8x8xf32>
    %61 = tpu.concatenate %39, %60 in 1 : vector<8x8xf32>, vector<8x8xf32> -> vector<8x16xf32>
    %c0_25 = arith.constant 0 : index
    %c0_26 = arith.constant 0 : index
    %62 = vector.load %arg8[%c0_25, %c0_26] : memref<8x16xf32, #tpu.memory_space<vmem>>, vector<8x16xf32>
    tpu.vector_store %arg8[%c0_25, %c0_26], %61 {strides = array<i32>} : memref<8x16xf32, #tpu.memory_space<vmem>>, vector<8x16xf32>,
    return
  }
  func.func @transform_0(%arg0: i32) -> (i32, i32) {
    %c0_i32 = arith.constant 0 : i32
    %c0_i32_0 = arith.constant 0 : i32
    return %arg0, %c0_i32 : i32, i32
  }
  func.func @transform_1(%arg0: i32) -> (i32, i32) {
    %c0_i32 = arith.constant 0 : i32
    %c0_i32_0 = arith.constant 0 : i32
    %c0_i32_1 = arith.constant 0 : i32
    return %c0_i32, %c0_i32_0 : i32, i32
  }
  func.func @transform_2(%arg0: i32) -> (i32, i32) {
    %c0_i32 = arith.constant 0 : i32
    %c0_i32_0 = arith.constant 0 : i32
    %c0_i32_1 = arith.constant 0 : i32
    return %c0_i32, %c0_i32_0 : i32, i32
  }
  func.func @transform_3(%arg0: i32) -> (i32, i32) {
    %c0_i32 = arith.constant 0 : i32
    %c0_i32_0 = arith.constant 0 : i32
    %c0_i32_1 = arith.constant 0 : i32
    return %c0_i32, %c0_i32_0 : i32, i32
  }
  func.func @transform_4(%arg0: i32) -> (i32, i32) {
    %c0_i32 = arith.constant 0 : i32
    %c0_i32_0 = arith.constant 0 : i32
    %c0_i32_1 = arith.constant 0 : i32
    return %c0_i32, %c0_i32_0 : i32, i32
  }
  func.func @transform_5(%arg0: i32) -> (i32, i32) {
    %c0_i32 = arith.constant 0 : i32
    %c0_i32_0 = arith.constant 0 : i32
    %c0_i32_1 = arith.constant 0 : i32
    return %c0_i32, %c0_i32_0 : i32, i32
  }
  func.func @transform_6(%arg0: i32) -> (i32, i32) {
    %c0_i32 = arith.constant 0 : i32
    %c0_i32_0 = arith.constant 0 : i32
    %c0_i32_1 = arith.constant 0 : i32
    return %c0_i32, %c0_i32_0 : i32, i32
  }
  func.func @transform_7(%arg0: i32) -> (i32, i32) {
    %c0_i32 = arith.constant 0 : i32
    %c0_i32_0 = arith.constant 0 : i32
    return %arg0, %c0_i32 : i32, i32
  }
}

</mosaic_0001>

<bundles_post_ra>
// kernel: tpu_custom_call.1
= control target key start
LH: loop header
LB: loop body
LE: loop exit
PB: predicated region body
PF: predicated region fallthrough
CT: control target
= control target key end

     0   :  { %vm34_vm0 = vcmask 130048   ;;  %s360_s0 = inlined_call_operand.vmem [shape: f32[8,16], index: 0, kind: input, shape index: {}]   ;;  %s361_s1 = inlined_call_operand.vmem [shape: f32[16,64], index: 1, kind: input, shape index: {}]   ;;  %s362_s2 = inlined_call_operand.vmem [shape: f32[1,64], index: 2, kind: input, shape index: {}]   ;;  %s363_s3 = inlined_call_operand.vmem [shape: f32[64,16], index: 3, kind: input, shape index: {}]   ;;  %s364_s4 = inlined_call_operand.vmem [shape: f32[1,16], index: 4, kind: input, shape index: {}]   ;;  %s365_s5 = inlined_call_operand.vmem [shape: f32[8,8], index: 5, kind: input, shape index: {}]   ;;  %s366_s6 = inlined_call_operand.vmem [shape: f32[1,8], index: 6, kind: input, shape index: {}]   ;;  %s367_s7 = inlined_call_operand.hbm [shape: f32[8,16], index: 7, kind: output, shape index: {}]  }
   0x1   :  { %v29_v0 = vld [vmem:[%s361_s1 + $0x8] sm:$0xff]  ;;  %v28_v1 = vld [vmem:[%s361_s1] sm:$0xff]  ;;  %v66_v3 = vld [vmem:[%s363_s3 + $0x38] sm:$0xff] }
   0x2   :  { %52 = vmatpush.msra.mxu0 %v29_v0  ;;  %v313_v2 = vld [vmem:[%s360_s0] sm:$0xff]  ;;  %v65_v4 = vld [vmem:[%s363_s3 + $0x30] sm:$0xff]  ;;  %83 = vmatpush.msra.mxu1 %v66_v3  ;;  %v64_v5 = vld [vmem:[%s363_s3 + $0x28] sm:$0xff] }
   0x4   :  { %53 = vmatpush.msra.mxu0 %v28_v1  ;;  %84 = vmatpush.msra.mxu1 %v65_v4 }
   0x5   :  { %213 = vmatmul.msk.f32.vlgmr.msra.gmra.mxu0 %vm34_vm0, %v313_v2 }
   0x6   :  { %12 = vsyncpa [#allocation3], 0  ;;  %v63_v6 = vld [vmem:[%s363_s3 + $0x20] sm:$0xff]  ;;  %85 = vmatpush.msra.mxu1 %v64_v5  ;;  %v62_v7 = vld [vmem:[%s363_s3 + $0x18] sm:$0xff]  ;;  %vm71_vm1 = vcmask 523264   ;;  %vm149_vm2 = vcmask 64512  }
   0x7   :  { %v61_v8 = vld [vmem:[%s363_s3 + $0x10] sm:$0xff]  ;;  %v60_v9 = vld [vmem:[%s363_s3 + $0x8] sm:$0xff]  ;;  %v59_v10 = vld [vmem:[%s363_s3] sm:$0xff]  ;;  %s204_s30 = sshll.u32 %s367_s7, 4  ;;  %s205_s30 = int_to_ptr.hbm [resolvable:$true] %s204_s30 }
   0x8   :  { %86 = vmatpush.msra.mxu1 %v63_v6  ;;  %v220_v11 = vld [vmem:[%s362_s2] ss:$0 sm:$0xff]  ;;  %s261_s2 = smov 120  }
   0x9   :  { %v144_v15 = vld [vmem:[%s365_s5] sm:$0xff]  ;;  %s262_s5 = smov 8  }
   0xa   :  { %87 = vmatpush.msra.mxu1 %v62_v7  ;;  %168 = vmatpush.msra.mxu2 %v144_v15  ;;  %v221_v16 = vld [vmem:[%s364_s4] ss:$0 sm:$0xff] }
   0xb   :  { %v222_v48 = vld [vmem:[%s366_s6] ss:$0 sm:$0xff]  ;;  %s263_s6 = smov [#allocation2]  }
   0xc   :  { %88 = vmatpush.msra.mxu1 %v61_v8  ;;  %s202_s27 = sshll.u32 %s263_s6, 4  ;;  %s203_s27 = int_to_ptr.vmem [resolvable:$true] %s202_s27 }
   0xe   :  { %89 = vmatpush.msra.mxu1 %v60_v9 }
  0x10   :  { %90 = vmatpush.msra.mxu1 %v59_v10 }
  0x82   :  { %v55_v12 = vpop.f32.mrf.mxu0 }
  0x83   :  { %v56_v13 = vadd.f32 %v220_v11, %v55_v12 }
  0x85   :  { %v58_v14 = vmax.f32 %v56_v13, 0.0 }
  0x87   :  { %214 = vmatmul.msk.f32.vlgmr.msra.gmra.mxu1 %vm71_vm1, %v58_v14 }
 0x104   :  { %v92_v17 = vpop.f32.mrf.mxu1 }
 0x105   :  { %v93_v18 = vadd.f32 %v221_v16, %v92_v17 }
 0x107   :  { %v215_v19 = vmul.f32 -1.442695, %v93_v18  ;;  %v117_v20 = vand.u32 2147483647, %v93_v18  ;;  %v114_v21 = vmax.f32 %v93_v18, 0.0  ;;  %vm115_vm8 = vcmp.ne.f32.partialorder %v93_v18, %v93_v18 }
 0x109   :  { %223 = vpow2.f32 %v215_v19  ;;  %v118_v22 = vsub.f32 0.0, %v117_v20  ;;  %216 = vmatmul.msk.f32.vlgmr.msra.gmra.mxu2 %vm149_vm2, %v114_v21 }
 0x10b   :  { %v119_v23 = vmul.f32 1.442695, %v118_v22 }
 0x10d   :  { %225 = vpow2.f32 %v119_v23 }
 0x10f   :  { %v224_v24 = vpop.eup %223 }
 0x110   :  { %v98_v25 = vadd.f32 1.0, %v224_v24 }
 0x112   :  { %227 = vrcp.f32 %v98_v25  ;;  %v108_v35 = vand.u32 2147483647, %v98_v25  ;;  %v110_v36 = vand.u32 2147483648, %v98_v25  ;;  %vm104_vm5 = vweird.f32 %v98_v25 }
 0x113   :  { %v226_v26 = vpop.eup %225 }
 0x114   :  { %v121_v27 = vadd.f32 1.0, %v226_v26  ;;  %v124_v28 = vmul.f32 -0.5, %v226_v26  ;;  %v127_v32 = vand.u32 2147483647, %v226_v26  ;;  %v111_v42 = vor.u32 1.1754944e-38, %v110_v36 }
 0x115   :  { %vm109_vm7 = vcmp.eq.f32.partialorder %v108_v35, 8.507059e+37 }
 0x116   :  { %229 = vlog2.f32 %v121_v27  ;;  %v125_v31 = vadd.f32 1.0, %v124_v28  ;;  %vm128_vm4 = vcmp.lt.f32.partialorder %v127_v32, 0.0004427343 }
 0x118   :  { %v228_v29 = vpop.eup %227  ;;  %v126_v39 = vmul.f32 %v226_v26, %v125_v31 }
 0x119   :  { %v100_v30 = vmul.f32 %v228_v29, %v98_v25  ;;  %vm105_vm3 = vweird.f32 %v228_v29 }
 0x11a   :  { %vm106_vm6 = vmor %vm104_vm5, %vm105_vm3 }
 0x11b   :  { %v101_v33 = vsub.f32 1.0, %v100_v30 }
 0x11c   :  { %v230_v34 = vpop.eup %229 }
 0x11d   :  { %v102_v37 = vmul.f32 %v228_v29, %v101_v33  ;;  %v123_v38 = vmul.f32 0.6931472, %v230_v34 }
 0x11f   :  { %v103_v40 = vadd.f32 %v228_v29, %v102_v37  ;;  %v129_v41 = vsel %vm128_vm4, %v126_v39, %v123_v38 }
 0x120   :  { %v130_v43 = vadd.f32 %v129_v41, %v114_v21 }
 0x121   :  { %v107_v44 = vsel %vm106_vm6, %v228_v29, %v103_v40 }
 0x122   :  { %v112_v45 = vsel %vm109_vm7, %v111_v42, %v107_v44  ;;  %v131_v46 = vsel %vm115_vm8, %v93_v18, %v130_v43 }
 0x123   :  { %133 = vrot.lane.b32.xlu0 %v112_v45, %s261_s2  ;;  %v137_v47 = vsub.f32 1.0, %v112_v45 }
 0x12b   :  { %139 = vrot.lane.b32.xlu0 %v137_v47, %s261_s2 }
 0x18c   :  { %v170_v49 = vpop.f32.mrf.mxu2 }
 0x18d   :  { %v171_v50 = vadd.f32 %v222_v48, %v170_v49 }
 0x18f   :  { %v176_v51 = vand.u32 2147483647, %v171_v50  ;;  %v173_v62 = vmax.f32 %v171_v50, 0.0  ;;  %vm174_vm10 = vcmp.ne.f32.partialorder %v171_v50, %v171_v50 }
 0x191   :  { %v177_v52 = vsub.f32 0.0, %v176_v51 }
 0x193   :  { %v178_v53 = vmul.f32 1.442695, %v177_v52 }
 0x195   :  { %231 = vpow2.f32 %v178_v53  ;;  %v134_v3 = vpop.permute.xlu0 %133 }
 0x196   :  { %v136_v6 = vmul.f32 %v134_v3, %v131_v46 }
 0x19b   :  { %v232_v54 = vpop.eup %231 }
 0x19c   :  { %v180_v55 = vadd.f32 1.0, %v232_v54  ;;  %v183_v56 = vmul.f32 -0.5, %v232_v54  ;;  %v186_v58 = vand.u32 2147483647, %v232_v54 }
 0x19d   :  { %v140_v4 = vpop.permute.xlu0 %139 }
 0x19e   :  { %233 = vlog2.f32 %v180_v55  ;;  %v184_v57 = vadd.f32 1.0, %v183_v56  ;;  %vm187_vm9 = vcmp.lt.f32.partialorder %v186_v58, 0.0004427343  ;;  %v142_v5 = vmul.f32 %v140_v4, %v313_v2 }
 0x1a0   :  { %v185_v61 = vmul.f32 %v232_v54, %v184_v57  ;;  %v143_v7 = vadd.f32 %v142_v5, %v136_v6 }
 0x1a4   :  { %v234_v59 = vpop.eup %233 }
 0x1a5   :  { %v182_v60 = vmul.f32 0.6931472, %v234_v59 }
 0x1a7   :  { %v188_v63 = vsel %vm187_vm9, %v185_v61, %v182_v60 }
 0x1a8   :  { %v189_v0 = vadd.f32 %v188_v63, %v173_v62 }
 0x1aa   :  { %v190_v1 = vsel %vm174_vm10, %v171_v50, %v189_v0 }
 0x1ab   :  { %192 = vrot.lane.b32.xlu1 %v190_v1, %s262_s5 }
 0x21d   :  { %v193_v8 = vpop.permute.xlu1 %192 }
 0x21e   :  { %v195_v9 = vsel %vm149_vm2, %v143_v7, %v193_v8 }
 0x21f   :  { %196 = vst.msk [vmem:[#allocation2] sm:$0xff] %vm34_vm0, %v195_v9 }
 0x220   :  { %207 = dma.vmem_to_hbm [thread:$0]  %s203_s27, 128, %s205_s30, [#allocation3]  }
 0x221   :  { %259 = dma.done.wait [#allocation3], 128  }
 0x222   :  { %260 = vsyncadd [#allocation3], 4294967168 }
 0x223   :  { %212 = vsyncpa [#allocation3], 1 }

</bundles_post_ra>
